<compile_context>
chip_gen: v5e
topology: v5e:2x2
jax: 0.10.0
libtpu: 0.0.40
codegen_flags: <defaults>
</compile_context>

<pallas_src>
import functools

import jax
import jax.numpy as jnp
from jax.experimental import pallas as pl
from jax.experimental.pallas import tpu as pltpu


IN_DIM, HID_DIM, OUT_DIM = 9, 64, 9


# --------------------------------------------------------------------------
# Kernel
# --------------------------------------------------------------------------
def dqn_kernel(x_ref, w1_ref, b1_ref, w2_ref, b2_ref, w3_ref, b3_ref, o_ref,
               *, hid_dtype):
    # x_ref: (9, TB) bf16 ; w*: bf16 (out, in) ; b1/b2: (out,1) hid_dtype ;
    # b3: (9,1) f32 ; o_ref: (9, TB) out_dtype.
    x = x_ref[...]

    # fc1 + ReLU -> (64, TB); bias/ReLU in hid_dtype (bf16 on v6e/v7x).
    h1 = jnp.dot(w1_ref[...], x, preferred_element_type=jnp.float32)
    h1 = jnp.maximum(h1.astype(hid_dtype) + b1_ref[...], 0)

    # fc2 + ReLU -> (64, TB)
    h2 = jnp.dot(w2_ref[...], h1.astype(jnp.bfloat16),
                 preferred_element_type=jnp.float32)
    h2 = jnp.maximum(h2.astype(hid_dtype) + b2_ref[...], 0)

    # fc3 (no activation) -> (9, TB)
    out = jnp.dot(w3_ref[...], h2.astype(jnp.bfloat16),
                  preferred_element_type=jnp.float32)
    o_ref[...] = (out + b3_ref[...]).astype(o_ref.dtype)


# --------------------------------------------------------------------------
# Chip detection + tile selection
# --------------------------------------------------------------------------
def _tpu_flags():
    kind = ""
    try:
        d = jax.devices()[0]
        if d.platform == "tpu":
            kind = d.device_kind.lower()
    except Exception:
        pass
    is_v5e = ("v5e" in kind) or ("v5 lite" in kind) or ("v5litepod" in kind)
    bf16_vpu = ("v6" in kind) or ("v7" in kind)          # bf16 VPU path
    two_tc = ("v4" in kind) or ("v5p" in kind) or ("v7" in kind)
    return is_v5e, bf16_vpu, two_tc, kind


def _select_tile(B, tb_req, is_v5e, known_chip, two_tc):
    # v5e (16 MiB scoped-VMEM default) or unknown chip: conservative cap.
    tb_cap = 8192 if (is_v5e or not known_chip) else 16384
    tb = max(128, (min(tb_req, tb_cap) // 128) * 128)
    bp_min = pl.cdiv(B, 128) * 128
    tb = min(tb, bp_min)
    # 2-TC chips (v7x): keep >= 2 grid tiles so both cores get work.
    if two_tc and bp_min >= 256:
        tb = min(tb, pl.cdiv(bp_min, 256) * 128)
    bp = pl.cdiv(B, tb) * tb
    return tb, bp


# --------------------------------------------------------------------------
# Feature-major entry point: x is (9, B) -- batch already on the lane axis.
# No wrapper relayout passes; preferred entry for training-sized batches.
# --------------------------------------------------------------------------
def dqn_forward_feature_major(x_t, params, *, tb=8192, out_dtype=jnp.float32):
    w1, b1, w2, b2, w3, b3 = params        # w: (out, in), b: (out,)
    assert x_t.shape[0] == IN_DIM
    B = x_t.shape[1]

    is_v5e, bf16_vpu, two_tc, kind = _tpu_flags()
    hid_dtype = jnp.bfloat16 if bf16_vpu else jnp.float32
    tb, Bp = _select_tile(B, tb, is_v5e, bool(kind), two_tc)
    n_tiles = Bp // tb

    x_p = x_t.astype(jnp.bfloat16)
    if Bp != B:
        x_p = jnp.pad(x_p, ((0, 0), (0, Bp - B)))

    w1b = w1.astype(jnp.bfloat16)
    w2b = w2.astype(jnp.bfloat16)
    w3b = w3.astype(jnp.bfloat16)
    b1c = b1.reshape(-1, 1).astype(hid_dtype)
    b2c = b2.reshape(-1, 1).astype(hid_dtype)
    b3c = b3.reshape(-1, 1).astype(jnp.float32)

    weight_bytes = sum(a.size * a.dtype.itemsize
                       for a in (w1b, w2b, w3b, b1c, b2c, b3c))
    cost = pl.CostEstimate(
        flops=2 * Bp * (IN_DIM * HID_DIM + HID_DIM * HID_DIM + HID_DIM * OUT_DIM),
        transcendentals=0,
        bytes_accessed=Bp * IN_DIM * 2
        + Bp * OUT_DIM * jnp.dtype(out_dtype).itemsize
        + weight_bytes,
    )

    resident = lambda i: (0, 0)     # weights/biases: single block, DMA'd once

    out_p = pl.pallas_call(
        functools.partial(dqn_kernel, hid_dtype=hid_dtype),
        out_shape=jax.ShapeDtypeStruct((OUT_DIM, Bp), out_dtype),
        grid=(n_tiles,),
        in_specs=[
            pl.BlockSpec((IN_DIM, tb), lambda i: (0, i)),          # x tile
            pl.BlockSpec((HID_DIM, IN_DIM), resident),             # w1
            pl.BlockSpec((HID_DIM, 1), resident),                  # b1
            pl.BlockSpec((HID_DIM, HID_DIM), resident),            # w2
            pl.BlockSpec((HID_DIM, 1), resident),                  # b2
            pl.BlockSpec((OUT_DIM, HID_DIM), resident),            # w3
            pl.BlockSpec((OUT_DIM, 1), resident),                  # b3
        ],
        out_specs=pl.BlockSpec((OUT_DIM, tb), lambda i: (0, i)),
        compiler_params=pltpu.CompilerParams(
            dimension_semantics=("parallel",),        # 2-TC chips split batch
            vmem_limit_bytes=32 * 1024 * 1024,
        ),
        cost_estimate=cost,
    )(x_p, w1b, b1c, w2b, b2c, w3b, b3c)

    return out_p[:, :B] if Bp != B else out_p          # (9, B)


# --------------------------------------------------------------------------
# PyTorch-layout entry point: x is (B, 9).
# --------------------------------------------------------------------------
def dqn_forward(x, params, *, tb=8192, out_dtype=jnp.float32,
                small_batch_threshold=256):
    """x: (B, 9) float32.  Returns (B, 9) out_dtype."""
    B = x.shape[0]

    # Acting-path fast path: for tiny batches a plain XLA dot fuses into the
    # caller and avoids pad/transpose/cast + pallas_call dispatch overhead.
    if B < small_batch_threshold:
        return reference_forward(x, params).astype(out_dtype)

    # TODO(synk): for best end-to-end perf keep activations feature-major in
    # the surrounding DQN code and call dqn_forward_feature_major directly;
    # this wrapper still pays one transpose in and one transpose out.
    x_t = x.astype(jnp.bfloat16).T                          # (9, B) bf16
    out_t = dqn_forward_feature_major(x_t, params, tb=tb, out_dtype=out_dtype)
    return out_t.T                                          # (B, 9)


# --------------------------------------------------------------------------
# Params + reference
# --------------------------------------------------------------------------
def init_params(key):
    """PyTorch nn.Linear-style init: U(-1/sqrt(fan_in), 1/sqrt(fan_in));
    weights stored (out, in) like torch."""
    dims = [(IN_DIM, HID_DIM), (HID_DIM, HID_DIM), (HID_DIM, OUT_DIM)]
    params = []
    for fan_in, fan_out in dims:
        key, kw, kb = jax.random.split(key, 3)
        bound = 1.0 / jnp.sqrt(jnp.float32(fan_in))
        w = jax.random.uniform(kw, (fan_out, fan_in), jnp.float32, -bound, bound)
        b = jax.random.uniform(kb, (fan_out,), jnp.float32, -bound, bound)
        params += [w, b]
    return params


def reference_forward(x, params):
    """Pure-f32 JAX reference matching the PyTorch module semantics."""
    w1, b1, w2, b2, w3, b3 = params
    h1 = jnp.maximum(x @ w1.T + b1, 0.0)
    h2 = jnp.maximum(h1 @ w2.T + b2, 0.0)
    return h2 @ w3.T + b3


# --------------------------------------------------------------------------
# Self-test
# --------------------------------------------------------------------------
if __name__ == "__main__":
    key = jax.random.PRNGKey(0)
    key, kx, kx2, kx3 = jax.random.split(key, 4)
    params = init_params(key)

    # 1) Acting-style batch -> fast path (exact f32, no pallas_call).
    B = 8
    x = jax.random.normal(kx, (B, IN_DIM), jnp.float32)
    out_small = jax.block_until_ready(dqn_forward(x, params))
    ref_small = reference_forward(x, params)
    assert out_small.shape == (B, OUT_DIM)
    assert jnp.allclose(out_small, ref_small, atol=1e-5, rtol=1e-5)

    # 2) Training-style batch, non-multiple of 128 -> Pallas kernel with
    #    padding + multi-tile grid (small tb to force >= 2 tiles).
    B2 = 461
    x2 = jax.random.normal(kx2, (B2, IN_DIM), jnp.float32)
    out2 = jax.block_until_ready(dqn_forward(x2, params, tb=256))
    ref2 = reference_forward(x2, params)
    assert out2.shape == (B2, OUT_DIM)
    assert jnp.allclose(out2, ref2, atol=3e-2, rtol=3e-2)   # bf16 MXU operands

    # 3) Feature-major entry (no wrapper relayout), default tile selection.
    B3 = 2048
    x3 = jax.random.normal(kx3, (IN_DIM, B3), jnp.float32)
    out3 = jax.block_until_ready(dqn_forward_feature_major(x3, params))
    ref3 = reference_forward(x3.T, params).T
    assert out3.shape == (OUT_DIM, B3)
    assert jnp.allclose(out3, ref3, atol=3e-2, rtol=3e-2)

    print("KERNEL_OK")
</pallas_src>

<mosaic_0001>
module attributes {stable_mosaic.version = 11 : i64} {
  func.func @dqn_kernel(%arg0: i32, %arg1: memref<9x256xbf16, #tpu.memory_space<vmem>>, %arg2: memref<64x9xbf16, #tpu.memory_space<vmem>>, %arg3: memref<64x1xf32, #tpu.memory_space<vmem>>, %arg4: memref<64x64xbf16, #tpu.memory_space<vmem>>, %arg5: memref<64x1xf32, #tpu.memory_space<vmem>>, %arg6: memref<9x64xbf16, #tpu.memory_space<vmem>>, %arg7: memref<9x1xf32, #tpu.memory_space<vmem>>, %arg8: memref<9x256xf32, #tpu.memory_space<vmem>>) attributes {dimension_semantics = [#tpu.dimension_semantics<parallel>], iteration_bounds = array<i64: 2>, scalar_prefetch = 0 : i64, scratch_operands = 0 : i64, tpu.core_type = #tpu.core_type<tc>, window_params = [{transform_indices = @transform_0, window_bounds = array<i64: 9, 256>}, {pipeline_mode = #tpu.pipeline_mode<synchronous>, transform_indices = @transform_1, window_bounds = array<i64: 64, 9>}, {pipeline_mode = #tpu.pipeline_mode<synchronous>, transform_indices = @transform_2, window_bounds = array<i64: 64, 1>}, {pipeline_mode = #tpu.pipeline_mode<synchronous>, transform_indices = @transform_3, window_bounds = array<i64: 64, 64>}, {pipeline_mode = #tpu.pipeline_mode<synchronous>, transform_indices = @transform_4, window_bounds = array<i64: 64, 1>}, {pipeline_mode = #tpu.pipeline_mode<synchronous>, transform_indices = @transform_5, window_bounds = array<i64: 9, 64>}, {pipeline_mode = #tpu.pipeline_mode<synchronous>, transform_indices = @transform_6, window_bounds = array<i64: 9, 1>}, {transform_indices = @transform_7, window_bounds = array<i64: 9, 256>}]} {
    %c0 = arith.constant 0 : index
    %c0_0 = arith.constant 0 : index
    %0 = vector.load %arg1[%c0, %c0_0] : memref<9x256xbf16, #tpu.memory_space<vmem>>, vector<9x256xbf16>
    %c0_1 = arith.constant 0 : index
    %c0_2 = arith.constant 0 : index
    %1 = vector.load %arg2[%c0_1, %c0_2] : memref<64x9xbf16, #tpu.memory_space<vmem>>, vector<64x9xbf16>
    %cst = arith.constant dense<0.000000e+00> : vector<64x256xf32>
    %2 = tpu.matmul %1, %0, %cst {dimension_numbers = #tpu.dot_dimension_numbers<[1], [0], [0], [1], [0, 0, 1, 1], [], []>} : vector<64x9xbf16>, vector<9x256xbf16>, vector<64x256xf32> -> vector<64x256xf32>
    %c0_3 = arith.constant 0 : index
    %c0_4 = arith.constant 0 : index
    %3 = vector.load %arg3[%c0_3, %c0_4] : memref<64x1xf32, #tpu.memory_space<vmem>>, vector<64x1xf32>
    %4 = vector.broadcast %3 : vector<64x1xf32> to vector<64x256xf32>
    %5 = arith.addf %2, %4 : vector<64x256xf32>
    %cst_5 = arith.constant 0.000000e+00 : f32
    %6 = vector.broadcast %cst_5 : f32 to vector<64x256xf32>
    %7 = arith.maximumf %5, %6 : vector<64x256xf32>
    %c0_6 = arith.constant 0 : index
    %c0_7 = arith.constant 0 : index
    %8 = vector.load %arg4[%c0_6, %c0_7] : memref<64x64xbf16, #tpu.memory_space<vmem>>, vector<64x64xbf16>
    %9 = arith.truncf %7 : vector<64x256xf32> to vector<64x256xbf16>
    %cst_8 = arith.constant dense<0.000000e+00> : vector<64x256xf32>
    %10 = tpu.matmul %8, %9, %cst_8 {dimension_numbers = #tpu.dot_dimension_numbers<[1], [0], [0], [1], [0, 0, 1, 1], [], []>} : vector<64x64xbf16>, vector<64x256xbf16>, vector<64x256xf32> -> vector<64x256xf32>
    %c0_9 = arith.constant 0 : index
    %c0_10 = arith.constant 0 : index
    %11 = vector.load %arg5[%c0_9, %c0_10] : memref<64x1xf32, #tpu.memory_space<vmem>>, vector<64x1xf32>
    %12 = vector.broadcast %11 : vector<64x1xf32> to vector<64x256xf32>
    %13 = arith.addf %10, %12 : vector<64x256xf32>
    %cst_11 = arith.constant 0.000000e+00 : f32
    %14 = vector.broadcast %cst_11 : f32 to vector<64x256xf32>
    %15 = arith.maximumf %13, %14 : vector<64x256xf32>
    %c0_12 = arith.constant 0 : index
    %c0_13 = arith.constant 0 : index
    %16 = vector.load %arg6[%c0_12, %c0_13] : memref<9x64xbf16, #tpu.memory_space<vmem>>, vector<9x64xbf16>
    %17 = arith.truncf %15 : vector<64x256xf32> to vector<64x256xbf16>
    %cst_14 = arith.constant dense<0.000000e+00> : vector<9x256xf32>
    %18 = tpu.matmul %16, %17, %cst_14 {dimension_numbers = #tpu.dot_dimension_numbers<[1], [0], [0], [1], [0, 0, 1, 1], [], []>} : vector<9x64xbf16>, vector<64x256xbf16>, vector<9x256xf32> -> vector<9x256xf32>
    %c0_15 = arith.constant 0 : index
    %c0_16 = arith.constant 0 : index
    %19 = vector.load %arg7[%c0_15, %c0_16] : memref<9x1xf32, #tpu.memory_space<vmem>>, vector<9x1xf32>
    %20 = vector.broadcast %19 : vector<9x1xf32> to vector<9x256xf32>
    %21 = arith.addf %18, %20 : vector<9x256xf32>
    %c0_17 = arith.constant 0 : index
    %c0_18 = arith.constant 0 : index
    %22 = vector.load %arg8[%c0_17, %c0_18] : memref<9x256xf32, #tpu.memory_space<vmem>>, vector<9x256xf32>
    tpu.vector_store %arg8[%c0_17, %c0_18], %21 {strides = array<i32>} : memref<9x256xf32, #tpu.memory_space<vmem>>, vector<9x256xf32>,
    return
  }
  func.func @transform_0(%arg0: i32) -> (i32, i32) {
    %c0_i32 = arith.constant 0 : i32
    %c0_i32_0 = arith.constant 0 : i32
    return %c0_i32, %arg0 : i32, i32
  }
  func.func @transform_1(%arg0: i32) -> (i32, i32) {
    %c0_i32 = arith.constant 0 : i32
    %c0_i32_0 = arith.constant 0 : i32
    %c0_i32_1 = arith.constant 0 : i32
    return %c0_i32, %c0_i32_0 : i32, i32
  }
  func.func @transform_2(%arg0: i32) -> (i32, i32) {
    %c0_i32 = arith.constant 0 : i32
    %c0_i32_0 = arith.constant 0 : i32
    %c0_i32_1 = arith.constant 0 : i32
    return %c0_i32, %c0_i32_0 : i32, i32
  }
  func.func @transform_3(%arg0: i32) -> (i32, i32) {
    %c0_i32 = arith.constant 0 : i32
    %c0_i32_0 = arith.constant 0 : i32
    %c0_i32_1 = arith.constant 0 : i32
    return %c0_i32, %c0_i32_0 : i32, i32
  }
  func.func @transform_4(%arg0: i32) -> (i32, i32) {
    %c0_i32 = arith.constant 0 : i32
    %c0_i32_0 = arith.constant 0 : i32
    %c0_i32_1 = arith.constant 0 : i32
    return %c0_i32, %c0_i32_0 : i32, i32
  }
  func.func @transform_5(%arg0: i32) -> (i32, i32) {
    %c0_i32 = arith.constant 0 : i32
    %c0_i32_0 = arith.constant 0 : i32
    %c0_i32_1 = arith.constant 0 : i32
    return %c0_i32, %c0_i32_0 : i32, i32
  }
  func.func @transform_6(%arg0: i32) -> (i32, i32) {
    %c0_i32 = arith.constant 0 : i32
    %c0_i32_0 = arith.constant 0 : i32
    %c0_i32_1 = arith.constant 0 : i32
    return %c0_i32, %c0_i32_0 : i32, i32
  }
  func.func @transform_7(%arg0: i32) -> (i32, i32) {
    %c0_i32 = arith.constant 0 : i32
    %c0_i32_0 = arith.constant 0 : i32
    return %c0_i32, %arg0 : i32, i32
  }
}

</mosaic_0001>

<bundles_post_ra>
// kernel: tpu_custom_call.1
= control target key start
LH: loop header
LB: loop body
LE: loop exit
PB: predicated region body
PF: predicated region fallthrough
CT: control target
= control target key end

     0   :  { %12 = vsyncpa [#allocation4], 0  ;;  %s1265_s0 = inlined_call_operand.vmem [shape: bf16[9,512], index: 0, kind: input, shape index: {}]   ;;  %s1266_s1 = inlined_call_operand.vmem [shape: bf16[64,9], index: 1, kind: input, shape index: {}]   ;;  %s1267_s2 = inlined_call_operand.vmem [shape: f32[64,1], index: 2, kind: input, shape index: {}]   ;;  %s1268_s3 = inlined_call_operand.vmem [shape: bf16[64,64], index: 3, kind: input, shape index: {}]   ;;  %s1269_s4 = inlined_call_operand.vmem [shape: f32[64,1], index: 4, kind: input, shape index: {}]   ;;  %s1270_s5 = inlined_call_operand.vmem [shape: bf16[9,64], index: 5, kind: input, shape index: {}]   ;;  %s1271_s6 = inlined_call_operand.vmem [shape: f32[9,1], index: 6, kind: input, shape index: {}]   ;;  %s1272_s7 = inlined_call_operand.hbm [shape: f32[9,512], index: 7, kind: output, shape index: {}]  }
   0x1   :  { %14 = vsyncpa [#allocation4 + $0x1], 0  ;;  %s1065_s24 = smov 0   ;;  %s1067_s25 = smov 0  }
   0x2   :  { %s1069_s26 = smov 0   ;;  %s1071_s27 = smov 0  }
   0x3 LB: > { %s819_s28 = sadd.s32 4294967295, %s1018_s27   ;;  %s820_s29 = sadd.s32 4294967294, %s1018_s27   ;;  %s1018_s27 = sphi %s1071_s27, %s1278_s27   ;;  %s1014_s26 = sphi %s1069_s26, %s1277_s26   ;;  %s1010_s25 = sphi %s1067_s25, %s1276_s25   ;;  %s1006_s24 = sphi %s1065_s24, %s1275_s24  }
   0x4   : > { %s1088_s30 = sadd.s32 1, %s1018_s27   ;;  %s27_s8 = sadd.s32 1, %s1014_s26 }
   0x5   : > { %s24_s9 = ssub.s32 %s1018_s27, %s1088_s30  ;;  %p34_p0 = scmp.ne.s32.totalorder %s1014_s26, %s1010_s25 }
   0x6   : > { %p25_p1 = scmp.eq.s32.totalorder %s24_s9, 0  ;;  %p35_p2 = scmp.eq.s32.totalorder %s1018_s27, 0 }
   0x7   : > { %p190_p3 = scmp.eq.s32.totalorder %s819_s28, 1  ;;  %p195_p4 = scmp.ne.s32.totalorder %s1010_s25, %s1006_s24 }
   0x8   : > { %s1101_s10 = scalar_select %p25_p1, %s1014_s26, %s27_s8  }
   0x9   : > { %p36_p5 = por %p35_p2, %p34_p0  ;;  %p1103_p6 = por %p190_p3, %p34_p0 }
   0xa   : > { %p196_p7 = scmp.eq.s32.totalorder %s820_s29, 1  ;;  %p822_p9 = scmp.ge.s32.totalorder %s1018_s27, 2 }
   0xc   : > { %p1107_p8 = por %p196_p7, %p195_p4  ;;  %230 = sbr.rel (%p822_p9) target bundleno = 23 (0x17), region = 40 }
  0x11   : > { %233 = sbr.rel (!%p36_p5) target bundleno = 23 (0x17), region = 44  ;;  %s235_s13 = sand.u32 (%p36_p5), 1, %s1014_s26  }
  0x12   : > { %s896_s14 = sshll.u32 (%p36_p5), %s1018_s27, 3  ;;  %s823_s15 = sshll.u32 (%p36_p5), %s235_s13, 4 }
  0x13   : > { %s240_s18 = scalar_lea.vmem (%p36_p5), %s1265_s0, %s896_s14  ;;  %s237_s19 = scalar_lea.vmem (%p36_p5), [#allocation2], %s823_s15 }
  0x14   : > { %v271_v0 = vld [vmem:[%s240_s18] sm:$0xff] (%p36_p5)  ;;  %v273_v1 = vld [vmem:[%s240_s18 + $0x10] sm:$0xff] (%p36_p5) }
  0x15   : > { %272 = vst [vmem:[%s237_s19] sm:$0xff] (%p36_p5), %v271_v0 }
  0x16   : > { %274 = vst [vmem:[%s237_s19 + $0x8] sm:$0xff] %v273_v1 }
  0x17 PF: > { %p826_p10 = scmp.ge.s32.totalorder %s1018_s27, 1  ;;  %p279_p11 = scmp.lt.s32.totalorder %s1018_s27, 3 }
  0x19   : > { %p280_p12 = pnand %p826_p10, %p279_p11 }
  0x1a   : > { %s1125_s22 = sand.u32 (!%p280_p12), 1, %s1010_s25   ;;  %s908_s14 = sshll.u32 (!%p280_p12), %s819_s28, 4 }
  0x1b   : > { %283 = sbr.rel (%p280_p12) target bundleno = 595 (0x253), region = 82  ;;  %s827_s23 = sshll.u32 (!%p280_p12), %s1125_s22, 4 }
  0x1c   : > { %s288_s9 = scalar_lea.vmem (!%p280_p12), [#allocation2], %s827_s23  ;;  %s828_s13 = sshll.u32 (!%p280_p12), %s1125_s22, 5 }
  0x1d   : > { %s316_s15 = scalar_lea.vmem (!%p280_p12), [#allocation3], %s828_s13  ;;  %s748_s18 = scalar_lea.hbm (!%p280_p12), %s1272_s7, %s908_s14 }
  0x1e   : > { %s749_s19 = sshll.u32 (!%p280_p12), %s316_s15, 4  ;;  %s1233_s20 = sshll.u32 (!%p280_p12), %s748_s18, 4  ;;  %s750_s19 = int_to_ptr.vmem [resolvable:$true] %s749_s19  ;;  %s752_s20 = int_to_ptr.hbm [resolvable:$true] %s1233_s20 }
  0x1f   : > { %s737_s28 = scalar_lea.sflag (!%p280_p12), [#allocation4], %s1125_s22  ;;  %s970_s21 = sshra.s32 (!%p280_p12), %s752_s20, 4  ;;  %s971_s21 = int_to_ptr.hbm [resolvable:$true] %s970_s21 }
  0x20   : > { %v336_v2 = vld [vmem:[%s1267_s2 + $0x30] sm:$0xff]  ;;  %vm419_vm0 = vcmask 1043456   ;;  %vm420_vm1 = vcmask 1044480   ;;  %v1020_v3 = vmov 0   ;;  %v1021_v4 = vmov 65535   ;;  %v334_v7 = vld [vmem:[%s1267_s2 + $0x20] sm:$0xff]  ;;  %p977_p2 = scmp.lt.s32.totalorder %s971_s21, %s1272_s7 }
  0x21   : > { %953 = vset.pattern.permute.xlu0 %v1020_v3  ;;  %v421_v5 = vsel %vm419_vm0, 4294967295, %v1021_v4  ;;  %954 = vset.pattern.permute.xlu1 %v1020_v3  ;;  %v847_v8 = vld [vmem:[%s288_s9] sm:$0xf]  ;;  %v898_v9 = vld [vmem:[%s288_s9 + $0x4] sm:$0x10]  ;;  %vm406_vm2 = vcmask 72704  }
  0x22   : > { %370 = vperm.xlu0 %953, %v336_v2   ;;  %v422_v6 = vsel %vm420_vm1, %v421_v5, 0  ;;  %955 = vset.pattern.permute.xlu2 %v1020_v3  ;;  %v897_v10 = vld [vmem:[%s288_s9 + $0x4] sm:$0xf]  ;;  %v848_v11 = vor.u32 %v898_v9, %v847_v8  ;;  %v849_v12 = vld [vmem:[%s288_s9 + $0x8] sm:$0x10]  ;;  %vm587_vm3 = vcmask 523264  }
  0x23   : > { %360 = vperm.xlu1 %954, %v334_v7   ;;  %v852_v13 = vor.u32 %v897_v10, %v849_v12  ;;  %v899_v16 = vld [vmem:[%s1266_s1] sm:$0xff]  ;;  %v337_v17 = vld [vmem:[%s1267_s2 + $0x38] sm:$0xff]  ;;  %v335_v18 = vld [vmem:[%s1267_s2 + $0x28] sm:$0xff]  ;;  %s972_s23 = scalar_lea.hbm %s971_s21, 32  ;;  %s976_s9 = scalar_lea.hbm %s1272_s7, 64 }
  0x24   : > { %v424_v14 = vand.u32 %v848_v11, %v422_v6  ;;  %v330_v19 = vld [vmem:[%s1267_s2] sm:$0xff]  ;;  %v331_v20 = vld [vmem:[%s1267_s2 + $0x8] sm:$0xff]  ;;  %v526_v22 = vld [vmem:[%s1269_s4 + $0x38] sm:$0xff]  ;;  %p973_p13 = scmp.ne.s32.totalorder %s971_s21, %s972_s23  ;;  %p978_p3 = scmp.lt.s32.totalorder %s976_s9, %s972_s23 }
  0x25   : > { %v427_v15 = vand.u32 %v852_v13, %v422_v6  ;;  %v900_v21 = vld [vmem:[%s1266_s1 + $0x8] sm:$0xff]  ;;  %v523_v23 = vld [vmem:[%s1269_s4 + $0x20] sm:$0xff]  ;;  %v332_v24 = vld [vmem:[%s1267_s2 + $0x10] sm:$0xff] }
  0x26   : > { %436 = vmatpush.bf16.msra.mxu0 %v424_v14  ;;  %350 = vperm.xlu2 %955, %v332_v24   ;;  %v521_v25 = vld [vmem:[%s1269_s4 + $0x10] sm:$0xff]  ;;  %v522_v26 = vld [vmem:[%s1269_s4 + $0x18] sm:$0xff]  ;;  %v520_v29 = vld [vmem:[%s1269_s4 + $0x8] sm:$0xff]  ;;  %p974_p0 = pnand %p973_p13, %p1103_p6  ;;  %p979_p4 = por %p978_p3, %p977_p2 }
  0x27   : > { %465 = vmatpush.bf16.msra.mxu1 %v427_v15  ;;  %v333_v27 = vld [vmem:[%s1267_s2 + $0x18] sm:$0xff]  ;;  %v901_v28 = vld [vmem:[%s1266_s1 + $0x10] sm:$0xff]  ;;  %v684_v30 = vld [vmem:[%s1271_s6] sm:$0xff] }
  0x28   : > { %v525_v31 = vld [vmem:[%s1269_s4 + $0x30] sm:$0xff]  ;;  %v524_v32 = vld [vmem:[%s1269_s4 + $0x28] sm:$0xff]  ;;  %v902_v33 = vld [vmem:[%s1266_s1 + $0x18] sm:$0xff]  ;;  %p975_p1 = pneg %p974_p0 }
  0x29   : > { %853 = vmatmul.msk.bf16.vlgmr.msra.gmra.mxu0 %vm406_vm2, %v899_v16  ;;  %v519_v34 = vld [vmem:[%s1269_s4] sm:$0xff]  ;;  %v685_v35 = vld [vmem:[%s1271_s6 + $0x8] sm:$0x1] }
  0x2a   : > { %375 = vperm.xlu0 %953, %v337_v17   ;;  %857 = vmatmul.msk.bf16.vlgmr.msra.gmra.mxu1 %vm406_vm2, %v899_v16  ;;  %p980_p5 = pnand %p979_p4, %p975_p1 }
  0x2b   : > { %365 = vperm.xlu1 %954, %v335_v18  }
  0x2e   : > { %355 = vperm.xlu2 %955, %v333_v27  }
  0x32   : > { %340 = vperm.xlu0 %953, %v330_v19  }
  0x33   : > { %345 = vperm.xlu1 %954, %v331_v20  }
  0x36   : > { %559 = vperm.xlu2 %955, %v525_v31  }
  0x39   : > { %854 = vmatmul.msk.bf16.gmra.mxu0 %vm406_vm2, %v900_v21 }
  0x3a   : > { %564 = vperm.xlu0 %953, %v526_v22   ;;  %858 = vmatmul.msk.bf16.gmra.mxu1 %vm406_vm2, %v900_v21 }
  0x3b   : > { %549 = vperm.xlu1 %954, %v523_v23  }
  0x3e   : > { %554 = vperm.xlu2 %955, %v524_v32  }
  0x42   : > { %539 = vperm.xlu0 %953, %v521_v25  }
  0x43   : > { %544 = vperm.xlu1 %954, %v522_v26  }
  0x46   : > { %529 = vperm.xlu2 %955, %v519_v34  }
  0x49   : > { %855 = vmatmul.msk.bf16.gmra.mxu0 %vm406_vm2, %v901_v28 }
  0x4a   : > { %534 = vperm.xlu0 %953, %v520_v29   ;;  %859 = vmatmul.msk.bf16.gmra.mxu1 %vm406_vm2, %v901_v28 }
  0x4b   : > { %688 = vperm.xlu1 %954, %v684_v30  }
  0x4e   : > { %693 = vperm.xlu2 %955, %v685_v35  }
  0x59   : > { %856 = vmatmul.msk.bf16.gmra.mxu0 %vm406_vm2, %v902_v33 }
  0x5a   : > { %860 = vmatmul.msk.bf16.gmra.mxu1 %vm406_vm2, %v902_v33 }
  0x80   : > { %v351_v50 = vpop.permute.xlu2 %350 }
  0x88   : > { %v356_v61 = vpop.permute.xlu2 %355 }
  0x94   : > { %v371_v49 = vpop.permute.xlu0 %370 }
  0x95   : > { %v361_v48 = vpop.permute.xlu1 %360 }
  0x9c   : > { %v376_v54 = vpop.permute.xlu0 %375 }
  0x9d   : > { %v366_v53 = vpop.permute.xlu1 %365 }
  0xa4   : > { %v341_v15 = vpop.permute.xlu0 %340 }
  0xa5   : > { %v346_v9 = vpop.permute.xlu1 %345 }
  0xa6   : > { %v438_v36 = vpop.f32.mrf.mxu0 }
  0xa7   : > { %v467_v37 = vpop.f32.mrf.mxu1  ;;  %v439_v24 = vadd.f32 %v438_v36, %v341_v15  ;;  %v904_v36 = vld [vmem:[%s1268_s3 + $0x8] sm:$0xff] }
  0xa8   : > { %v468_v26 = vadd.f32 %v467_v37, %v341_v15  ;;  %v905_v37 = vld [vmem:[%s1268_s3 + $0x10] sm:$0xff] }
  0xa9   : > { %v487_v32 = vmax.f32 %v439_v24, 0.0 }
  0xaa   : > { %v488_v33 = vmax.f32 %v468_v26, 0.0 }
  0xae   : > { %v440_v38 = vpop.f32.mrf.mxu0 }
  0xaf   : > { %v469_v39 = vpop.f32.mrf.mxu1  ;;  %v441_v18 = vadd.f32 %v440_v38, %v346_v9  ;;  %v903_v38 = vld [vmem:[%s1268_s3] sm:$0xff] }
  0xb0   : > { %v470_v21 = vadd.f32 %v469_v39, %v346_v9  ;;  %v906_v39 = vld [vmem:[%s1268_s3 + $0x18] sm:$0xff] }
  0xb1   : > { %v489_v28 = vmax.f32 %v441_v18, 0.0 }
  0xb2   : > { %v490_v30 = vmax.f32 %v470_v21, 0.0 }
  0xb3   : > { %v511_v34 = vpack.c.bf16 %v489_v28, %v487_v32 }
  0xb4   : > { %v512_v35 = vpack.c.bf16 %v490_v30, %v488_v33 }
  0xb6   : > { %v443_v40 = vpop.f32.mrf.mxu0 }
  0xb7   : > { %v472_v41 = vpop.f32.mrf.mxu1  ;;  %v444_v13 = vadd.f32 %v443_v40, %v351_v50 }
  0xb8   : > { %v473_v16 = vadd.f32 %v472_v41, %v351_v50 }
  0xb9   : > { %v491_v25 = vmax.f32 %v444_v13, 0.0 }
  0xba   : > { %v492_v27 = vmax.f32 %v473_v16, 0.0 }
  0xbe   : > { %v445_v42 = vpop.f32.mrf.mxu0 }
  0xbf   : > { %v474_v43 = vpop.f32.mrf.mxu1  ;;  %v446_v6 = vadd.f32 %v445_v42, %v356_v61 }
  0xc0   : > { %v475_v10 = vadd.f32 %v474_v43, %v356_v61 }
  0xc1   : > { %v493_v19 = vmax.f32 %v446_v6, 0.0 }
  0xc2   : > { %v494_v22 = vmax.f32 %v475_v10, 0.0 }
  0xc3   : > { %v513_v29 = vpack.c.bf16 %v493_v19, %v491_v25 }
  0xc4   : > { %v514_v31 = vpack.c.bf16 %v494_v22, %v492_v27 }
  0xc6   : > { %v448_v44 = vpop.f32.mrf.mxu0 }
  0xc7   : > { %v477_v45 = vpop.f32.mrf.mxu1  ;;  %v449_v0 = vadd.f32 %v448_v44, %v361_v48 }
  0xc8   : > { %v478_v3 = vadd.f32 %v477_v45, %v361_v48 }
  0xc9   : > { %v495_v14 = vmax.f32 %v449_v0, 0.0 }
  0xca   : > { %v496_v17 = vmax.f32 %v478_v3, 0.0 }
  0xce   : > { %v450_v46 = vpop.f32.mrf.mxu0 }
  0xcf   : > { %v479_v47 = vpop.f32.mrf.mxu1  ;;  %v451_v58 = vadd.f32 %v450_v46, %v366_v53 }
  0xd0   : > { %v480_v62 = vadd.f32 %v479_v47, %v366_v53  ;;  %v560_v53 = vpop.permute.xlu2 %559 }
  0xd1   : > { %v497_v7 = vmax.f32 %v451_v58, 0.0 }
  0xd2   : > { %v498_v11 = vmax.f32 %v480_v62, 0.0 }
  0xd3   : > { %v515_v20 = vpack.c.bf16 %v497_v7, %v495_v14 }
  0xd4   : > { %v516_v23 = vpack.c.bf16 %v498_v11, %v496_v17 }
  0xd6   : > { %v453_v51 = vpop.f32.mrf.mxu0 }
  0xd7   : > { %v482_v52 = vpop.f32.mrf.mxu1  ;;  %v454_v55 = vadd.f32 %v453_v51, %v371_v49 }
  0xd8   : > { %v483_v56 = vadd.f32 %v482_v52, %v371_v49  ;;  %v565_v52 = vpop.permute.xlu0 %564 }
  0xd9   : > { %v499_v1 = vmax.f32 %v454_v55, 0.0 }
  0xda   : > { %v500_v4 = vmax.f32 %v483_v56, 0.0  ;;  %v550_v56 = vpop.permute.xlu1 %549 }
  0xde   : > { %v455_v57 = vpop.f32.mrf.mxu0 }
  0xdf   : > { %v456_v59 = vadd.f32 %v455_v57, %v376_v54  ;;  %v484_v60 = vpop.f32.mrf.mxu1 }
  0xe0   : > { %v485_v63 = vadd.f32 %v484_v60, %v376_v54  ;;  %v540_v57 = vpop.permute.xlu0 %539 }
  0xe1   : > { %v501_v2 = vmax.f32 %v456_v59, 0.0  ;;  %v555_v59 = vpop.permute.xlu2 %554 }
  0xe2   : > { %v502_v5 = vmax.f32 %v485_v63, 0.0  ;;  %v545_v6 = vpop.permute.xlu1 %544 }
  0xe3   : > { %v517_v8 = vpack.c.bf16 %v501_v2, %v499_v1 }
  0xe4   : > { %v518_v12 = vpack.c.bf16 %v502_v5, %v500_v4 }
  0xe5   : > { %604 = vmatpush.bf16.msra.mxu2 %v517_v8 }
  0xe6   : > { %633 = vmatpush.bf16.msra.mxu3 %v518_v12 }
  0xe8   : > { %v535_v18 = vpop.permute.xlu0 %534 }
  0xe9   : > { %605 = vmatpush.bf16.msra.mxu2 %v515_v20  ;;  %v530_v24 = vpop.permute.xlu2 %529 }
  0xea   : > { %634 = vmatpush.bf16.msra.mxu3 %v516_v23 }
  0xed   : > { %606 = vmatpush.bf16.msra.mxu2 %v513_v29 }
  0xee   : > { %635 = vmatpush.bf16.msra.mxu3 %v514_v31 }
  0xf1   : > { %607 = vmatpush.bf16.msra.mxu2 %v511_v34 }
  0xf2   : > { %636 = vmatpush.bf16.msra.mxu3 %v512_v35 }
  0xf4   : > { %877 = vmatmul.msk.bf16.vlgmr.msra.gmra.mxu2 %vm587_vm3, %v903_v38 }
  0xf5   : > { %881 = vmatmul.msk.bf16.vlgmr.msra.gmra.mxu3 %vm587_vm3, %v903_v38 }
 0x104   : > { %878 = vmatmul.msk.bf16.gmra.mxu2 %vm587_vm3, %v904_v36 }
 0x105   : > { %882 = vmatmul.msk.bf16.gmra.mxu3 %vm587_vm3, %v904_v36  ;;  %v887_v36 = vld [vmem:[%s1270_s5] sm:$0xf] }
 0x114   : > { %879 = vmatmul.msk.bf16.gmra.mxu2 %vm587_vm3, %v905_v37 }
 0x115   : > { %883 = vmatmul.msk.bf16.gmra.mxu3 %vm587_vm3, %v905_v37  ;;  %v907_v37 = vld [vmem:[%s1270_s5] sm:$0x10] }
 0x124   : > { %880 = vmatmul.msk.bf16.gmra.mxu2 %vm587_vm3, %v906_v39 }
 0x125   : > { %884 = vmatmul.msk.bf16.gmra.mxu3 %vm587_vm3, %v906_v39 }
 0x177   : > { %v609_v40 = vpop.f32.mrf.mxu2 }
 0x178   : > { %v638_v41 = vpop.f32.mrf.mxu3  ;;  %v610_v28 = vadd.f32 %v609_v40, %v530_v24 }
 0x179   : > { %v639_v30 = vadd.f32 %v638_v41, %v530_v24 }
 0x17a   : > { %v658_v38 = vmax.f32 %v610_v28, 0.0 }
 0x17b   : > { %v659_v39 = vmax.f32 %v639_v30, 0.0 }
 0x17f   : > { %v611_v42 = vpop.f32.mrf.mxu2 }
 0x180   : > { %v640_v43 = vpop.f32.mrf.mxu3  ;;  %v612_v21 = vadd.f32 %v611_v42, %v535_v18  ;;  %v888_v42 = vor.u32 %v907_v37, %v887_v36 }
 0x181   : > { %v641_v25 = vadd.f32 %v640_v43, %v535_v18  ;;  %v689_v43 = vpop.permute.xlu1 %688 }
 0x182   : > { %v660_v32 = vmax.f32 %v612_v21, 0.0 }
 0x183   : > { %v661_v34 = vmax.f32 %v641_v25, 0.0 }
 0x184   : > { %v676_v40 = vpack.c.bf16 %v660_v32, %v658_v38 }
 0x185   : > { %v677_v41 = vpack.c.bf16 %v661_v34, %v659_v39 }
 0x187   : > { %v614_v44 = vpop.f32.mrf.mxu2 }
 0x188   : > { %v643_v45 = vpop.f32.mrf.mxu3  ;;  %v615_v16 = vadd.f32 %v614_v44, %v540_v57 }
 0x189   : > { %v644_v19 = vadd.f32 %v643_v45, %v540_v57 }
 0x18a   : > { %v662_v29 = vmax.f32 %v615_v16, 0.0 }
 0x18b   : > { %v663_v31 = vmax.f32 %v644_v19, 0.0 }
 0x18f   : > { %v616_v46 = vpop.f32.mrf.mxu2 }
 0x190   : > { %v645_v47 = vpop.f32.mrf.mxu3  ;;  %v617_v10 = vadd.f32 %v616_v46, %v545_v6 }
 0x191   : > { %v646_v13 = vadd.f32 %v645_v47, %v545_v6 }
 0x192   : > { %v664_v22 = vmax.f32 %v617_v10, 0.0 }
 0x193   : > { %v665_v26 = vmax.f32 %v646_v13, 0.0 }
 0x194   : > { %v678_v33 = vpack.c.bf16 %v664_v22, %v662_v29 }
 0x195   : > { %v679_v35 = vpack.c.bf16 %v665_v26, %v663_v31 }
 0x197   : > { %v619_v48 = vpop.f32.mrf.mxu2 }
 0x198   : > { %v648_v49 = vpop.f32.mrf.mxu3  ;;  %v620_v3 = vadd.f32 %v619_v48, %v550_v56  ;;  %v694_v48 = vpop.permute.xlu2 %693 }
 0x199   : > { %v649_v7 = vadd.f32 %v648_v49, %v550_v56 }
 0x19a   : > { %v666_v17 = vmax.f32 %v620_v3, 0.0 }
 0x19b   : > { %v667_v20 = vmax.f32 %v649_v7, 0.0 }
 0x19f   : > { %v621_v50 = vpop.f32.mrf.mxu2 }
 0x1a0   : > { %v650_v51 = vpop.f32.mrf.mxu3  ;;  %v622_v62 = vadd.f32 %v621_v50, %v555_v59 }
 0x1a1   : > { %v651_v1 = vadd.f32 %v650_v51, %v555_v59 }
 0x1a2   : > { %v668_v11 = vmax.f32 %v622_v62, 0.0 }
 0x1a3   : > { %v669_v14 = vmax.f32 %v651_v1, 0.0 }
 0x1a4   : > { %v680_v23 = vpack.c.bf16 %v668_v11, %v666_v17 }
 0x1a5   : > { %v681_v27 = vpack.c.bf16 %v669_v14, %v667_v20 }
 0x1a7   : > { %v624_v54 = vpop.f32.mrf.mxu2 }
 0x1a8   : > { %v653_v55 = vpop.f32.mrf.mxu3  ;;  %v625_v58 = vadd.f32 %v624_v54, %v560_v53 }
 0x1a9   : > { %v654_v60 = vadd.f32 %v653_v55, %v560_v53 }
 0x1aa   : > { %v670_v4 = vmax.f32 %v625_v58, 0.0 }
 0x1ab   : > { %v671_v8 = vmax.f32 %v654_v60, 0.0 }
 0x1af   : > { %v626_v61 = vpop.f32.mrf.mxu2 }
 0x1b0   : > { %v627_v63 = vadd.f32 %v626_v61, %v565_v52  ;;  %v655_v0 = vpop.f32.mrf.mxu3 }
 0x1b1   : > { %v656_v2 = vadd.f32 %v655_v0, %v565_v52 }
 0x1b2   : > { %v672_v5 = vmax.f32 %v627_v63, 0.0 }
 0x1b3   : > { %v673_v9 = vmax.f32 %v656_v2, 0.0 }
 0x1b4   : > { %v682_v12 = vpack.c.bf16 %v672_v5, %v670_v4 }
 0x1b5   : > { %v683_v15 = vpack.c.bf16 %v673_v9, %v671_v8 }
 0x1b6   : > { %708 = vmatpush.bf16.msrb.mxu0 %v682_v12 }
 0x1b7   : > { %722 = vmatpush.bf16.msrb.mxu1 %v683_v15 }
 0x1ba   : > { %709 = vmatpush.bf16.msrb.mxu0 %v680_v23 }
 0x1bb   : > { %723 = vmatpush.bf16.msrb.mxu1 %v681_v27 }
 0x1be   : > { %710 = vmatpush.bf16.msrb.mxu0 %v678_v33 }
 0x1bf   : > { %724 = vmatpush.bf16.msrb.mxu1 %v679_v35 }
 0x1c2   : > { %711 = vmatpush.bf16.msrb.mxu0 %v676_v40 }
 0x1c3   : > { %725 = vmatpush.bf16.msrb.mxu1 %v677_v41 }
 0x1c5   : > { %889 = vmatmul.msk.bf16.vlgmr.msrb.gmra.mxu0 %vm587_vm3, %v888_v42 }
 0x1c6   : > { %890 = vmatmul.msk.bf16.vlgmr.msrb.gmra.mxu1 %vm587_vm3, %v888_v42 }
 0x242   : > { %v713_v44 = vpop.f32.mrf.mxu0 }
 0x243   : > { %v714_v45 = vadd.f32 %v713_v44, %v689_v43  ;;  %v727_v46 = vpop.f32.mrf.mxu1 }
 0x244   : > { %v728_v47 = vadd.f32 %v727_v46, %v689_v43 }
 0x245   : > { %732 = vst [vmem:[%s316_s15] sm:$0xff] %v714_v45 }
 0x246   : > { %733 = vst [vmem:[%s316_s15 + $0x8] sm:$0xff] %v728_v47 }
 0x24a   : > { %v715_v49 = vpop.f32.mrf.mxu0 }
 0x24b   : > { %v716_v50 = vadd.f32 %v715_v49, %v694_v48  ;;  %v729_v51 = vpop.f32.mrf.mxu1 }
 0x24c   : > { %v730_v52 = vadd.f32 %v729_v51, %v694_v48 }
 0x24d   : > { %734 = vst [vmem:[%s316_s15 + $0x10] sm:$0x1] %v716_v50 }
 0x24e   : > { %735 = vst [vmem:[%s316_s15 + $0x18] sm:$0x1] %v730_v52 }
 0x24f   : > { %983 = shalt.err (!%p980_p5)
}
 0x250   : > { %s1022_s22 = smov 256   ;;  %s1023_s15 = smov 512  }
 0x251   : > { %s1024_s16 = smov 16  }
 0x252   : > { %909 = dma.vmem_to_hbm [thread:$0]  (%p1103_p6), %s750_s19, 512, %s752_s20, %s737_s28, %s1022_s22, %s1023_s15, %s1024_s16  }
 0x253 PF: > { %s766_s17 = sand.u32 1, %s1006_s24   ;;  %p912_p7 = pnand %p822_p9, %p1107_p8 }
 0x254   : > { %s767_s18 = scalar_lea.sflag [#allocation4], %s766_s17 }
 0x255   : > { %p913_p10 = pneg %p912_p7 }
 0x257   : > { %1001 = dma.done.wait (%p913_p10), %s767_s18, 512  }
 0x258   : > { %1003 = vsyncadd (%p913_p10), %s767_s18, 4294966784  ;;  %p17_p11 = scmp.ge.s32.totalorder %s1088_s30, 4   ;;  %s1275_s24 = smov %s1010_s25 }
 0x259   : > { %s1276_s25 = smov %s1014_s26  ;;  %s1277_s26 = smov %s1101_s10 }
 0x25a   : > { %s1278_s27 = smov %s1088_s30  ;;  %19 = sbr.rel (!%p17_p11) target bundleno = 3 (0x3), region = 126 }
 0x25f   :  { %773 = vsyncpa [#allocation4], 1 }
 0x260   :  { %775 = vsyncpa [#allocation4 + $0x1], 1 }

</bundles_post_ra>
